<compile_context>
chip_gen: v5e
topology: v5e:2x2
jax: 0.10.0
libtpu: 0.0.40
codegen_flags: <defaults>
</compile_context>

<pallas_src>
import jax
import jax.numpy as jnp
from jax import lax
from jax.experimental import pallas as pl
from jax.experimental.pallas import tpu as pltpu


def _head_matmul(x_tile, w_tile):
    # x_tile: (tm, tk), w_tile: (tn, tk) -> (tm, tn) in f32.
    # Contract on the last dim of both operands -> no transpose of W.
    return lax.dot_general(
        x_tile, w_tile,
        dimension_numbers=(((1,), (1,)), ((), ())),
        preferred_element_type=jnp.float32,
    )


def aux_decoder_kernel_simple(x_ref, w_ref, b_ref, o_ref):
    # d_model fully resident: single MXU pass, bias add in f32, one store.
    o_ref[...] = (_head_matmul(x_ref[...], w_ref[...]) + b_ref[...]).astype(o_ref.dtype)


def aux_decoder_kernel_ksplit(x_ref, w_ref, b_ref, o_ref, acc_ref):
    # d_model tiled: accumulate in f32 scratch across the (innermost) k axis.
    k = pl.program_id(2)

    @pl.when(k == 0)
    def _():
        acc_ref[...] = jnp.zeros_like(acc_ref)

    acc_ref[...] += _head_matmul(x_ref[...], w_ref[...])

    @pl.when(k == pl.num_programs(2) - 1)
    def _():
        o_ref[...] = (acc_ref[...] + b_ref[...]).astype(o_ref.dtype)


def aux_decoder(x, weight, bias, *, tm=256, tn=1024, tk=2048,
                vmem_limit_bytes=None):
    """Pallas equivalent of AuxDecoder.forward (a Linear head: x @ W.T + b)."""
    *lead, D = x.shape
    V, Dw = weight.shape
    assert D == Dw, "d_model mismatch between x and weight"
    assert bias.shape == (V,)

    xf = x.reshape(-1, D)
    M = xf.shape[0]

    # Tile sizes: use the full extent when small (always a legal block shape),
    # otherwise aligned tiles (tm multiple of 8, tn multiple of 128 so output
    # stores stay lane-dense / unmasked).
    tm = M if M <= tm else tm
    tn = V if V <= tn else tn
    # Only split d_model when the tile exactly divides it (padded K garbage
    # would otherwise contaminate valid outputs); else keep it fully resident.
    if D <= tk or D % tk != 0:
        tk = D
    nk = D // tk

    bias2d = bias.astype(jnp.float32).reshape(1, V)

    nv = pl.cdiv(V, tn)
    nm = pl.cdiv(M, tm)

    itm_x = jnp.dtype(x.dtype).itemsize
    itm_w = jnp.dtype(weight.dtype).itemsize

    # VMEM footprint estimate: double-buffered x / W / bias / out tiles plus
    # the f32 accumulator scratch (only present on the k-split path).
    est_bytes = 2 * (tm * tk * itm_x + tn * tk * itm_w + tm * tn * itm_x + tn * 4)
    if nk > 1:
        est_bytes += tm * tn * 4
    if vmem_limit_bytes is None:
        # Leave headroom, but stay within v7x's 64 MiB physical VMEM.
        vmem_limit_bytes = int(min(max(2 * est_bytes, 32 << 20), 64 << 20))

    cost = pl.CostEstimate(
        flops=2 * M * D * V,
        transcendentals=0,
        bytes_accessed=(M * D * itm_x) + (V * D * itm_w) + (M * V * itm_x) + V * 4,
    )

    common = dict(
        out_shape=jax.ShapeDtypeStruct((M, V), x.dtype),
        cost_estimate=cost,
    )

    if nk == 1:
        out = pl.pallas_call(
            aux_decoder_kernel_simple,
            grid=(nv, nm),
            in_specs=[
                pl.BlockSpec((tm, D), lambda v, m: (m, 0)),   # activation rows
                pl.BlockSpec((tn, D), lambda v, m: (v, 0)),   # weight vocab slice
                pl.BlockSpec((1, tn), lambda v, m: (0, v)),   # bias vocab slice (f32)
            ],
            out_specs=pl.BlockSpec((tm, tn), lambda v, m: (m, v)),
            compiler_params=pltpu.CompilerParams(
                dimension_semantics=("parallel", "parallel"),
                vmem_limit_bytes=vmem_limit_bytes,
            ),
            **common,
        )(xf, weight, bias2d)
    else:
        out = pl.pallas_call(
            aux_decoder_kernel_ksplit,
            grid=(nv, nm, nk),
            in_specs=[
                pl.BlockSpec((tm, tk), lambda v, m, k: (m, k)),
                pl.BlockSpec((tn, tk), lambda v, m, k: (v, k)),
                pl.BlockSpec((1, tn), lambda v, m, k: (0, v)),
            ],
            out_specs=pl.BlockSpec((tm, tn), lambda v, m, k: (m, v)),
            scratch_shapes=[pltpu.VMEM((tm, tn), jnp.float32)],
            compiler_params=pltpu.CompilerParams(
                dimension_semantics=("parallel", "parallel", "arbitrary"),
                vmem_limit_bytes=vmem_limit_bytes,
            ),
            **common,
        )(xf, weight, bias2d)

    return out.reshape(*lead, V)


def _linear_init(key, d_model, vocab_size, dtype=jnp.float32):
    # Mirrors nn.Linear's uniform(-1/sqrt(fan_in), 1/sqrt(fan_in)) init.
    kw, kb = jax.random.split(key)
    bound = 1.0 / (d_model ** 0.5)
    weight = jax.random.uniform(kw, (vocab_size, d_model), dtype=dtype,
                                minval=-bound, maxval=bound)
    bias = jax.random.uniform(kb, (vocab_size,), dtype=dtype,
                              minval=-bound, maxval=bound)
    return weight, bias


if __name__ == "__main__":
    key = jax.random.PRNGKey(0)
    k1, k2, k3, k4 = jax.random.split(key, 4)

    # --- Test 1: shapes consistent with the module's forward ---------------
    B, T, d_model, vocab_size = 2, 8, 32, 64
    x = jax.random.normal(k1, (B, T, d_model), dtype=jnp.float32)
    weight, bias = _linear_init(k2, d_model, vocab_size)

    y = aux_decoder(x, weight, bias)
    jax.block_until_ready(y)

    y_ref = jnp.einsum("btd,vd->btv", x, weight,
                       precision=lax.Precision.HIGHEST) + bias
    assert y.shape == (B, T, vocab_size)
    assert jnp.allclose(y, y_ref, atol=1e-4, rtol=1e-4)

    # --- Test 2: exercise all three grid axes (vocab / row / k tiling) -----
    B2, T2, d2, v2 = 2, 8, 256, 256
    x2 = jax.random.normal(k3, (B2, T2, d2), dtype=jnp.float32)
    w2, b2 = _linear_init(k4, d2, v2)

    y2 = aux_decoder(x2, w2, b2, tm=8, tn=128, tk=128)
    jax.block_until_ready(y2)

    y2_ref = jnp.einsum("btd,vd->btv", x2, w2,
                        precision=lax.Precision.HIGHEST) + b2
    assert y2.shape == (B2, T2, v2)
    assert jnp.allclose(y2, y2_ref, atol=1e-4, rtol=1e-4)

    print("KERNEL_OK")
</pallas_src>

<mosaic_0001>
module attributes {stable_mosaic.version = 11 : i64} {
  func.func @aux_decoder_kernel_simple(%arg0: i32, %arg1: i32, %arg2: memref<16x32xf32, #tpu.memory_space<vmem>>, %arg3: memref<64x32xf32, #tpu.memory_space<vmem>>, %arg4: memref<1x64xf32, #tpu.memory_space<vmem>>, %arg5: memref<16x64xf32, #tpu.memory_space<vmem>>) attributes {dimension_semantics = [#tpu.dimension_semantics<parallel>, #tpu.dimension_semantics<parallel>], iteration_bounds = array<i64: 1, 1>, scalar_prefetch = 0 : i64, scratch_operands = 0 : i64, tpu.core_type = #tpu.core_type<tc>, window_params = [{transform_indices = @transform_0, window_bounds = array<i64: 16, 32>}, {transform_indices = @transform_1, window_bounds = array<i64: 64, 32>}, {transform_indices = @transform_2, window_bounds = array<i64: 1, 64>}, {transform_indices = @transform_3, window_bounds = array<i64: 16, 64>}]} {
    %c0 = arith.constant 0 : index
    %c0_0 = arith.constant 0 : index
    %0 = vector.load %arg2[%c0, %c0_0] : memref<16x32xf32, #tpu.memory_space<vmem>>, vector<16x32xf32>
    %c0_1 = arith.constant 0 : index
    %c0_2 = arith.constant 0 : index
    %1 = vector.load %arg3[%c0_1, %c0_2] : memref<64x32xf32, #tpu.memory_space<vmem>>, vector<64x32xf32>
    %cst = arith.constant dense<0.000000e+00> : vector<16x64xf32>
    %2 = tpu.matmul %0, %1, %cst {dimension_numbers = #tpu.dot_dimension_numbers<[1], [1], [0], [0], [0, 0, 1, 0], [], []>} : vector<16x32xf32>, vector<64x32xf32>, vector<16x64xf32> -> vector<16x64xf32>
    %c0_3 = arith.constant 0 : index
    %c0_4 = arith.constant 0 : index
    %3 = vector.load %arg4[%c0_3, %c0_4] : memref<1x64xf32, #tpu.memory_space<vmem>>, vector<1x64xf32>
    %4 = vector.broadcast %3 : vector<1x64xf32> to vector<16x64xf32>
    %5 = arith.addf %2, %4 : vector<16x64xf32>
    %c0_5 = arith.constant 0 : index
    %c0_6 = arith.constant 0 : index
    %6 = vector.load %arg5[%c0_5, %c0_6] : memref<16x64xf32, #tpu.memory_space<vmem>>, vector<16x64xf32>
    tpu.vector_store %arg5[%c0_5, %c0_6], %5 {strides = array<i32>} : memref<16x64xf32, #tpu.memory_space<vmem>>, vector<16x64xf32>,
    return
  }
  func.func @transform_0(%arg0: i32, %arg1: i32) -> (i32, i32) {
    %c0_i32 = arith.constant 0 : i32
    %c0_i32_0 = arith.constant 0 : i32
    return %arg1, %c0_i32 : i32, i32
  }
  func.func @transform_1(%arg0: i32, %arg1: i32) -> (i32, i32) {
    %c0_i32 = arith.constant 0 : i32
    %c0_i32_0 = arith.constant 0 : i32
    return %arg0, %c0_i32 : i32, i32
  }
  func.func @transform_2(%arg0: i32, %arg1: i32) -> (i32, i32) {
    %c0_i32 = arith.constant 0 : i32
    %c0_i32_0 = arith.constant 0 : i32
    return %c0_i32, %arg0 : i32, i32
  }
  func.func @transform_3(%arg0: i32, %arg1: i32) -> (i32, i32) {
    %c0_i32 = arith.constant 0 : i32
    return %arg1, %arg0 : i32, i32
  }
}

</mosaic_0001>

<bundles_post_ra>
// kernel: tpu_custom_call.1
= control target key start
LH: loop header
LB: loop body
LE: loop exit
PB: predicated region body
PF: predicated region fallthrough
CT: control target
= control target key end

     0   :  { %vm29_vm0 = vcmask 261120   ;;  %s229_s0 = inlined_call_operand.vmem [shape: f32[16,32], index: 0, kind: input, shape index: {}]   ;;  %s230_s1 = inlined_call_operand.vmem [shape: f32[64,32], index: 1, kind: input, shape index: {}]   ;;  %s231_s2 = inlined_call_operand.vmem [shape: f32[1,64], index: 2, kind: input, shape index: {}]   ;;  %s232_s3 = inlined_call_operand.hbm [shape: f32[16,64], index: 3, kind: output, shape index: {}]  }
   0x1   :  { %v24_v0 = vld [vmem:[%s230_s1 + $0x38] sm:$0xff]  ;;  %v23_v1 = vld [vmem:[%s230_s1 + $0x30] sm:$0xff] }
   0x2   :  { %104 = vmatpush.xpose.msk.msra.mxu0 %vm29_vm0, %v24_v0  ;;  %114 = vmatpush.xpose.msk.msra.mxu1 %vm29_vm0, %v24_v0 }
   0x3   :  { %8 = vsyncpa [#allocation3], 0  ;;  %v22_v2 = vld [vmem:[%s230_s1 + $0x28] sm:$0xff]  ;;  %v21_v3 = vld [vmem:[%s230_s1 + $0x20] sm:$0xff]  ;;  %s92_s10 = sshll.u32 %s232_s3, 4  ;;  %vm83_vm1 = vcmask 523264   ;;  %s93_s10 = int_to_ptr.hbm [resolvable:$true] %s92_s10 }
   0x4   :  { %v20_v4 = vld [vmem:[%s230_s1 + $0x18] sm:$0xff]  ;;  %v19_v5 = vld [vmem:[%s230_s1 + $0x10] sm:$0xff]  ;;  %v18_v6 = vld [vmem:[%s230_s1 + $0x8] sm:$0xff]  ;;  %s154_s11 = smov 8  }
   0x5   :  { %v17_v7 = vld [vmem:[%s230_s1] sm:$0xff]  ;;  %v16_v9 = vld [vmem:[%s229_s0 + $0x8] sm:$0xff]  ;;  %s152_s1 = smov [#allocation2]  }
   0x6   :  { %105 = vmatpush.xpose.msk.msra.mxu0 %vm29_vm0, %v23_v1  ;;  %115 = vmatpush.xpose.msk.msra.mxu1 %vm29_vm0, %v23_v1  ;;  %v15_v8 = vld [vmem:[%s229_s0] sm:$0xff]  ;;  %s90_s7 = sshll.u32 %s152_s1, 4  ;;  %s153_s0 = smov 128   ;;  %s91_s7 = int_to_ptr.vmem [resolvable:$true] %s90_s7 }
   0x7   :  { %v125_v10 = vld [vmem:[%s231_s2] ss:$0 sm:$0xff] }
   0xa   :  { %106 = vmatpush.xpose.msk.msra.mxu0 %vm29_vm0, %v22_v2  ;;  %116 = vmatpush.xpose.msk.msra.mxu1 %vm29_vm0, %v22_v2 }
   0xe   :  { %107 = vmatpush.xpose.msk.msra.mxu0 %vm29_vm0, %v21_v3  ;;  %117 = vmatpush.xpose.msk.msra.mxu1 %vm29_vm0, %v21_v3 }
  0x12   :  { %108 = vmatpush.xpose.msk.msra.mxu0 %vm29_vm0, %v20_v4  ;;  %118 = vmatpush.xpose.msk.msra.mxu1 %vm29_vm0, %v20_v4 }
  0x16   :  { %109 = vmatpush.xpose.msk.msra.mxu0 %vm29_vm0, %v19_v5  ;;  %119 = vmatpush.xpose.msk.msra.mxu1 %vm29_vm0, %v19_v5 }
  0x1a   :  { %110 = vmatpush.xpose.msk.msra.mxu0 %vm29_vm0, %v18_v6  ;;  %120 = vmatpush.xpose.msk.msra.mxu1 %vm29_vm0, %v18_v6 }
  0x1e   :  { %111 = vmatpush.xpose.msk.msra.mxu0 %vm29_vm0, %v17_v7  ;;  %121 = vmatpush.xpose.msk.msra.mxu1 %vm29_vm0, %v17_v7 }
  0x21   :  { %112 = vmatmul.msk.f32.vlgmr.msra.gmra.mxu0 %vm29_vm0, %v15_v8  ;;  %113 = vmatmul.msk.f32.vlgmr.msra.gmra.mxu1 %vm29_vm0, %v16_v9 }
  0x9e   :  { %v77_v11 = vpop.f32.mrf.mxu0  ;;  %v80_v12 = vpop.f32.mrf.mxu1 }
  0x9f   :  { %v78_v13 = vadd.f32 %v125_v10, %v77_v11  ;;  %v81_v14 = vadd.f32 %v125_v10, %v80_v12 }
  0xa1   :  { %84 = vst.msk [vmem:[#allocation2] sm:$0xff] %vm83_vm1, %v78_v13 }
  0xa2   :  { %85 = vst.msk [vmem:[#allocation2 + $0x8] sm:$0xff] %vm83_vm1, %v81_v14 }
  0xa3   :  { %98 = dma.vmem_to_hbm [thread:$0]  %s91_s7, 256, %s93_s10, [#allocation3], %s153_s0, %s153_s0, %s154_s11  }
  0xa4   :  { %150 = dma.done.wait [#allocation3], 256  }
  0xa5   :  { %151 = vsyncadd [#allocation3], 4294967040 }
  0xa6   :  { %103 = vsyncpa [#allocation3], 1 }

</bundles_post_ra>
